<compile_context>
chip_gen: v7x
topology: tpu7x:2x2x1
jax: 0.10.0
libtpu: 0.0.40
codegen_flags: <defaults>
</compile_context>

<pallas_src>
import functools

import jax
import jax.numpy as jnp
from jax.experimental import pallas as pl
from jax.experimental.pallas import tpu as pltpu


def _round_up(x, m):
    return ((x + m - 1) // m) * m


# ----------------------------------------------------------------------------
# Kernel 1: conv-as-matmul (im2col patches @ resident weights)
#           + bias (in acc init) + ReLU + fused global average pool.
#   grid = (M/tm parallel, K/tk arbitrary); f32 (tm, N_pad) accumulator.
#   bf16 MXU inputs, f32 accumulation/epilogue, f32 pooled output.
# ----------------------------------------------------------------------------
def conv_pool_kernel(p_ref, w_ref, b_ref, pooled_ref, acc_ref, *,
                     hw, imgs_per_tile):
    k = pl.program_id(1)
    tk = p_ref.shape[1]

    # Bias folded into accumulator init (saves a full (tm, N) VPU add and the
    # separate zero-fill pass).
    @pl.when(k == 0)
    def _():
        acc_ref[...] = jnp.broadcast_to(b_ref[...], acc_ref.shape)

    # Slice this K step out of the VMEM-resident weights; the patch tile is
    # visited exactly once per (i, k), so patches stream from HBM only once.
    k0 = pl.multiple_of(k * tk, tk)
    acc_ref[...] += jnp.dot(p_ref[...], w_ref[pl.ds(k0, tk), :],
                            preferred_element_type=jnp.float32)

    # Last-K epilogue: ReLU + global average pool.  Each M tile covers
    # `imgs_per_tile` whole images, so the pooled result is exact and the full
    # feature map is never written to HBM.
    @pl.when(k == pl.num_programs(1) - 1)
    def _():
        fm = jnp.maximum(acc_ref[...], 0.0)                  # (tm, N_pad) f32
        fm = fm.reshape(imgs_per_tile, hw, fm.shape[-1])
        pooled_ref[0] = jnp.mean(fm, axis=1)                 # (g, N_pad)


def conv_relu_pool(patches, w, b, *, tm, tk, hw, imgs_per_tile):
    M, K_pad = patches.shape
    _, N_pad = w.shape
    assert M % tm == 0 and K_pad % tk == 0 and tm == imgs_per_tile * hw
    n_i, n_k = M // tm, K_pad // tk

    # Honest byte accounting for the weight-resident blocking: patches and
    # weights each stream from HBM exactly once.
    cost = pl.CostEstimate(
        flops=2 * M * K_pad * N_pad + M * N_pad,
        transcendentals=0,
        bytes_accessed=(M * K_pad * 2 + K_pad * N_pad * 2 + N_pad * 4
                        + n_i * imgs_per_tile * N_pad * 4))

    # Explicit VMEM budget (keeps a v5e/v6e-sized tiling from silently
    # overflowing v7x's 64 MiB physical VMEM once buffering is counted).
    need = (2 * K_pad * N_pad * 2          # resident weights (x2 buffer resv.)
            + 2 * tm * tk * 2              # double-buffered bf16 patch tiles
            + tm * N_pad * 4               # f32 accumulator scratch
            + 2 * N_pad * 4                # bias
            + 2 * imgs_per_tile * N_pad * 4  # pooled output buffers
            + (4 << 20))                   # headroom for internal scratch
    vmem_limit = min(max(need, 32 << 20), 48 << 20)

    kernel = functools.partial(conv_pool_kernel, hw=hw,
                               imgs_per_tile=imgs_per_tile)

    return pl.pallas_call(
        kernel,
        out_shape=jax.ShapeDtypeStruct((n_i, imgs_per_tile, N_pad),
                                       jnp.float32),
        grid_spec=pltpu.PrefetchScalarGridSpec(
            num_scalar_prefetch=0,
            grid=(n_i, n_k),
            in_specs=[
                # Patch tile: block index (i, k) is unique per grid step, so
                # the 9x-inflated patch matrix streams from HBM exactly once.
                pl.BlockSpec((tm, tk), lambda i, k: (i, k)),
                # Full conv weight, VMEM-resident: constant block index means
                # the pipeline DMAs it once and keeps it.
                # TODO(synk): pipeline_mode=pl.Buffered(1) would also drop the
                # second buffer reservation for this resident block.
                pl.BlockSpec((K_pad, N_pad), lambda i, k: (0, 0)),
                pl.BlockSpec((1, N_pad), lambda i, k: (0, 0)),   # bias f32
            ],
            out_specs=pl.BlockSpec((1, imgs_per_tile, N_pad),
                                   lambda i, k: (i, 0, 0)),
            scratch_shapes=[pltpu.VMEM((tm, N_pad), jnp.float32)],
        ),
        compiler_params=pltpu.CompilerParams(
            dimension_semantics=("parallel", "arbitrary"),
            vmem_limit_bytes=vmem_limit),
        cost_estimate=cost,
    )(patches, w, b)


# ----------------------------------------------------------------------------
# Kernel 2: encoder head on pooled features
#   Linear(embed) -> BatchNorm1d (batch statistics).  Input is the pooled
#   [B, Cf] matrix only (tiny), so a single VMEM-resident block is fine on
#   every TPU generation.
# ----------------------------------------------------------------------------
def encoder_head_kernel(pooled_ref, w_ref, b_ref, gamma_ref, beta_ref, o_ref):
    emb = jnp.dot(pooled_ref[...], w_ref[...],
                  preferred_element_type=jnp.float32) + b_ref[...]   # [B, E]
    # BatchNorm1d forward with batch statistics (training mode, eps=1e-5).
    # TODO(synk): eval-mode BatchNorm would use running_mean/running_var;
    # running-stat updates are not modeled here.
    mean = jnp.mean(emb, axis=0, keepdims=True)
    var = jnp.mean((emb - mean) ** 2, axis=0, keepdims=True)
    norm = (emb - mean) * jax.lax.rsqrt(var + 1e-5)
    o_ref[...] = norm * gamma_ref[...] + beta_ref[...]


def encoder_head(pooled, w_embed, b_embed, gamma, beta):
    B, _ = pooled.shape
    E_pad = w_embed.shape[1]
    vmem = pltpu.MemorySpace.VMEM
    return pl.pallas_call(
        encoder_head_kernel,
        out_shape=jax.ShapeDtypeStruct((B, E_pad), jnp.float32),
        in_specs=[pl.BlockSpec(memory_space=vmem)] * 5,
        out_specs=pl.BlockSpec(memory_space=vmem),
    )(pooled, w_embed, b_embed, gamma, beta)


# ----------------------------------------------------------------------------
# Full forward
# ----------------------------------------------------------------------------
def _images_per_tile(batch, hw, tm_target=512):
    """Whole images per conv M-tile: g | batch and g*hw <= tm_target, preferring
    >= 2 M tiles so both v7x TensorCores / megacore get work."""
    candidates = [g for g in range(1, batch + 1)
                  if batch % g == 0 and g * hw <= tm_target]
    if not candidates:
        return 1
    multi = [g for g in candidates if batch // g >= 2]
    return max(multi) if multi else max(candidates)


def encoder_cnn_forward(images_nchw, params):
    B, Cin, H, W = images_nchw.shape
    HW = H * W

    # im2col in bf16, emitted directly in NHWC so the big patch matrix needs no
    # transpose pass in HBM (only the small input image is transposed).  The
    # bf16 cast of the conv inputs is an intentional precision trade for MXU.
    images_nhwc = jnp.transpose(images_nchw, (0, 2, 3, 1)).astype(jnp.bfloat16)
    patches = jax.lax.conv_general_dilated_patches(
        images_nhwc, filter_shape=(3, 3), window_strides=(1, 1),
        padding="SAME", dimension_numbers=("NHWC", "HWIO", "NHWC"))
    K = patches.shape[-1]                      # Cin * 9, already on the lane axis
    patches = patches.reshape(B * HW, K)       # free reshape, no transpose

    conv_w = params["conv_w"]
    conv_b = params["conv_b"]
    Cf = conv_w.shape[1]

    # Pad only K / Cf to lane multiples; tm divides B*HW exactly so no M-pad
    # pass over the patch matrix is needed.  (At ResNet scale K and Cf are
    # already 128-aligned, so these pads become no-ops.)
    K_pad = _round_up(K, 128)
    N_pad = _round_up(Cf, 128)
    patches = jnp.pad(patches, ((0, 0), (0, K_pad - K)))
    w_p = jnp.pad(conv_w, ((0, K_pad - K), (0, N_pad - Cf))).astype(jnp.bfloat16)
    b_p = jnp.pad(conv_b, ((0, 0), (0, N_pad - Cf)))

    g = _images_per_tile(B, HW, tm_target=512)
    tm = g * HW
    tk = K_pad if K_pad <= 1024 else max(
        d for d in range(128, 1025, 128) if K_pad % d == 0)

    # Conv + bias + ReLU + fused global average pool -> [n_tiles, g, N_pad] f32.
    pooled = conv_relu_pool(patches, w_p, b_p, tm=tm, tk=tk,
                            hw=HW, imgs_per_tile=g)
    pooled = pooled.reshape(B, N_pad)          # tile order == image order

    # Encoder head: Linear(embed) + BatchNorm1d on pooled features.
    E = params["embed_w"].shape[1]
    E_pad = _round_up(E, 128)
    w_e = jnp.pad(params["embed_w"], ((0, N_pad - Cf), (0, E_pad - E)))
    b_e = jnp.pad(params["embed_b"], (0, E_pad - E)).reshape(1, E_pad)
    gamma = jnp.pad(params["bn_gamma"], (0, E_pad - E),
                    constant_values=1.0).reshape(1, E_pad)
    beta = jnp.pad(params["bn_beta"], (0, E_pad - E)).reshape(1, E_pad)

    out = encoder_head(pooled, w_e, b_e, gamma, beta)     # [B, E_pad]
    return out[:, :E]


def init_params(key, cin, feat_channels, embed_size, ksize=3):
    ks = jax.random.split(key, 4)
    k2 = cin * ksize * ksize
    return {
        "conv_w": jax.random.normal(ks[0], (k2, feat_channels),
                                    jnp.float32) * 0.1,
        "conv_b": jnp.zeros((1, feat_channels), jnp.float32),
        "embed_w": jax.random.normal(ks[1], (feat_channels, embed_size),
                                     jnp.float32) * 0.05,
        "embed_b": jax.random.normal(ks[2], (embed_size,), jnp.float32) * 0.01,
        "bn_gamma": jnp.ones((embed_size,), jnp.float32),
        "bn_beta": jnp.zeros((embed_size,), jnp.float32),
    }


if __name__ == "__main__":
    key = jax.random.PRNGKey(0)
    k_img, k_par = jax.random.split(key)

    B, Cin, H, W = 2, 3, 16, 16           # small NCHW images
    feat_channels = 128                    # stand-in for resnet.fc.in_features
    embed_size = 32

    images = jax.random.normal(k_img, (B, Cin, H, W), jnp.float32)
    params = init_params(k_par, Cin, feat_channels, embed_size)

    fwd = jax.jit(functools.partial(encoder_cnn_forward, params=params))
    out = fwd(images)
    jax.block_until_ready(out)

    assert out.shape == (B, embed_size), out.shape
    assert out.dtype == jnp.float32
    print("KERNEL_OK")
</pallas_src>

<mosaic_0001>
module attributes {stable_mosaic.version = 11 : i64} {
  func.func @conv_pool_kernel(%arg0: i32, %arg1: i32, %arg2: memref<256x128xbf16, #tpu.memory_space<vmem>>, %arg3: memref<128x128xbf16, #tpu.memory_space<vmem>>, %arg4: memref<1x128xf32, #tpu.memory_space<vmem>>, %arg5: memref<1x1x128xf32, #tpu.memory_space<vmem>>, %arg6: memref<256x128xf32, #tpu.memory_space<vmem>>) attributes {dimension_semantics = [#tpu.dimension_semantics<parallel>, #tpu.dimension_semantics<arbitrary>], iteration_bounds = array<i64: 2, 1>, scalar_prefetch = 0 : i64, scratch_operands = 1 : i64, tpu.core_type = #tpu.core_type<tc>, window_params = [{transform_indices = @transform_0, window_bounds = array<i64: 256, 128>}, {pipeline_mode = #tpu.pipeline_mode<synchronous>, transform_indices = @transform_1, window_bounds = array<i64: 128, 128>}, {pipeline_mode = #tpu.pipeline_mode<synchronous>, transform_indices = @transform_2, window_bounds = array<i64: 1, 128>}, {transform_indices = @transform_3, window_bounds = array<i64: 1, 1, 128>}]} {
    %c0_i32 = arith.constant 0 : i32
    %0 = arith.cmpi eq, %arg1, %c0_i32 : i32
    %1 = arith.extui %0 : i1 to i32
    %c0_i32_0 = arith.constant 0 : i32
    %2 = arith.cmpi ne, %1, %c0_i32_0 : i32
    scf.if %2 {
      %c0_9 = arith.constant 0 : index
      %c0_10 = arith.constant 0 : index
      %15 = vector.load %arg4[%c0_9, %c0_10] : memref<1x128xf32, #tpu.memory_space<vmem>>, vector<1x128xf32>
      %16 = vector.shape_cast %15 : vector<1x128xf32> to vector<1x128xf32>
      %17 = vector.broadcast %16 : vector<1x128xf32> to vector<256x128xf32>
      %c0_11 = arith.constant 0 : index
      %c0_12 = arith.constant 0 : index
      %18 = vector.load %arg6[%c0_11, %c0_12] : memref<256x128xf32, #tpu.memory_space<vmem>>, vector<256x128xf32>
      tpu.vector_store %arg6[%c0_11, %c0_12], %17 {strides = array<i32>} : memref<256x128xf32, #tpu.memory_space<vmem>>, vector<256x128xf32>,
    } else {
    }
    %c128_i32 = arith.constant 128 : i32
    %3 = arith.muli %arg1, %c128_i32 : i32
    %4 = tpu.assume_multiple %3, 128 : i32
    %c0 = arith.constant 0 : index
    %c0_1 = arith.constant 0 : index
    %5 = vector.load %arg6[%c0, %c0_1] : memref<256x128xf32, #tpu.memory_space<vmem>>, vector<256x128xf32>
    %c0_2 = arith.constant 0 : index
    %c0_3 = arith.constant 0 : index
    %6 = vector.load %arg2[%c0_2, %c0_3] : memref<256x128xbf16, #tpu.memory_space<vmem>>, vector<256x128xbf16>
    %7 = arith.index_cast %4 : i32 to index
    %c0_4 = arith.constant 0 : index
    %8 = vector.load %arg3[%7, %c0_4] : memref<128x128xbf16, #tpu.memory_space<vmem>>, vector<128x128xbf16>
    %cst = arith.constant dense<0.000000e+00> : vector<256x128xf32>
    %9 = tpu.matmul %6, %8, %cst {dimension_numbers = #tpu.dot_dimension_numbers<[1], [0], [0], [1], [0, 0, 1, 1], [], []>} : vector<256x128xbf16>, vector<128x128xbf16>, vector<256x128xf32> -> vector<256x128xf32>
    %10 = arith.addf %5, %9 : vector<256x128xf32>
    %c0_5 = arith.constant 0 : index
    %c0_6 = arith.constant 0 : index
    %11 = vector.load %arg6[%c0_5, %c0_6] : memref<256x128xf32, #tpu.memory_space<vmem>>, vector<256x128xf32>
    tpu.vector_store %arg6[%c0_5, %c0_6], %10 {strides = array<i32>} : memref<256x128xf32, #tpu.memory_space<vmem>>, vector<256x128xf32>,
    %c0_i32_7 = arith.constant 0 : i32
    %12 = arith.cmpi eq, %arg1, %c0_i32_7 : i32
    %13 = arith.extui %12 : i1 to i32
    %c0_i32_8 = arith.constant 0 : i32
    %14 = arith.cmpi ne, %13, %c0_i32_8 : i32
    scf.if %14 {
      %c0_9 = arith.constant 0 : index
      %c0_10 = arith.constant 0 : index
      %15 = vector.load %arg6[%c0_9, %c0_10] : memref<256x128xf32, #tpu.memory_space<vmem>>, vector<256x128xf32>
      %cst_11 = arith.constant 0.000000e+00 : f32
      %16 = vector.broadcast %cst_11 : f32 to vector<256x128xf32>
      %17 = arith.maximumf %15, %16 : vector<256x128xf32>
      %18 = vector.shape_cast %17 : vector<256x128xf32> to vector<1x256x128xf32>
      %cst_12 = arith.constant dense<0.000000e+00> : vector<1x128xf32>
      %19 = vector.multi_reduction <add>, %18, %cst_12 [1] : vector<1x256x128xf32> to vector<1x128xf32>
      %cst_13 = arith.constant 2.560000e+02 : f32
      %20 = vector.broadcast %cst_13 : f32 to vector<1x128xf32>
      %21 = arith.divf %19, %20 : vector<1x128xf32>
      %c0_14 = arith.constant 0 : index
      %c0_15 = arith.constant 0 : index
      %c0_16 = arith.constant 0 : index
      %22 = vector.load %arg5[%c0_14, %c0_15, %c0_16] : memref<1x1x128xf32, #tpu.memory_space<vmem>>, vector<1x1x128xf32>
      %23 = vector.shape_cast %22 : vector<1x1x128xf32> to vector<1x128xf32>
      %24 = vector.shape_cast %21 : vector<1x128xf32> to vector<1x1x128xf32>
      tpu.vector_store %arg5[%c0_14, %c0_15, %c0_16], %24 {strides = array<i32>} : memref<1x1x128xf32, #tpu.memory_space<vmem>>, vector<1x1x128xf32>,
    } else {
    }
    return
  }
  func.func @transform_0(%arg0: i32, %arg1: i32) -> (i32, i32) {
    %c0_i32 = arith.constant 0 : i32
    return %arg0, %arg1 : i32, i32
  }
  func.func @transform_1(%arg0: i32, %arg1: i32) -> (i32, i32) {
    %c0_i32 = arith.constant 0 : i32
    %c0_i32_0 = arith.constant 0 : i32
    %c0_i32_1 = arith.constant 0 : i32
    return %c0_i32, %c0_i32_0 : i32, i32
  }
  func.func @transform_2(%arg0: i32, %arg1: i32) -> (i32, i32) {
    %c0_i32 = arith.constant 0 : i32
    %c0_i32_0 = arith.constant 0 : i32
    %c0_i32_1 = arith.constant 0 : i32
    return %c0_i32, %c0_i32_0 : i32, i32
  }
  func.func @transform_3(%arg0: i32, %arg1: i32) -> (i32, i32, i32) {
    %c0_i32 = arith.constant 0 : i32
    %c0_i32_0 = arith.constant 0 : i32
    %c0_i32_1 = arith.constant 0 : i32
    return %arg0, %c0_i32, %c0_i32_0 : i32, i32, i32
  }
}

module attributes {stable_mosaic.version = 11 : i64} {
  func.func @encoder_head_kernel(%arg0: memref<2x128xf32, #tpu.memory_space<vmem>>, %arg1: memref<128x128xf32, #tpu.memory_space<vmem>>, %arg2: memref<1x128xf32, #tpu.memory_space<vmem>>, %arg3: memref<1x128xf32, #tpu.memory_space<vmem>>, %arg4: memref<1x128xf32, #tpu.memory_space<vmem>>, %arg5: memref<2x128xf32, #tpu.memory_space<vmem>>) attributes {dimension_semantics = [], scalar_prefetch = 0 : i64, scratch_operands = 0 : i64, tpu.core_type = #tpu.core_type<tc>} {
    %c0 = arith.constant 0 : index
    %c0_0 = arith.constant 0 : index
    %0 = vector.load %arg0[%c0, %c0_0] : memref<2x128xf32, #tpu.memory_space<vmem>>, vector<2x128xf32>
    %c0_1 = arith.constant 0 : index
    %c0_2 = arith.constant 0 : index
    %1 = vector.load %arg1[%c0_1, %c0_2] : memref<128x128xf32, #tpu.memory_space<vmem>>, vector<128x128xf32>
    %cst = arith.constant dense<0.000000e+00> : vector<2x128xf32>
    %2 = tpu.matmul %0, %1, %cst {dimension_numbers = #tpu.dot_dimension_numbers<[1], [0], [0], [1], [0, 0, 1, 1], [], []>} : vector<2x128xf32>, vector<128x128xf32>, vector<2x128xf32> -> vector<2x128xf32>
    %c0_3 = arith.constant 0 : index
    %c0_4 = arith.constant 0 : index
    %3 = vector.load %arg2[%c0_3, %c0_4] : memref<1x128xf32, #tpu.memory_space<vmem>>, vector<1x128xf32>
    %4 = vector.broadcast %3 : vector<1x128xf32> to vector<2x128xf32>
    %5 = arith.addf %2, %4 : vector<2x128xf32>
    %cst_5 = arith.constant dense<0.000000e+00> : vector<128xf32>
    %6 = vector.multi_reduction <add>, %5, %cst_5 [0] : vector<2x128xf32> to vector<128xf32>
    %7 = vector.shape_cast %6 : vector<128xf32> to vector<1x128xf32>
    %cst_6 = arith.constant 2.000000e+00 : f32
    %8 = vector.broadcast %cst_6 : f32 to vector<1x128xf32>
    %9 = arith.divf %7, %8 : vector<1x128xf32>
    %10 = vector.broadcast %9 : vector<1x128xf32> to vector<2x128xf32>
    %11 = arith.subf %5, %10 : vector<2x128xf32>
    %12 = arith.mulf %11, %11 : vector<2x128xf32>
    %cst_7 = arith.constant dense<0.000000e+00> : vector<128xf32>
    %13 = vector.multi_reduction <add>, %12, %cst_7 [0] : vector<2x128xf32> to vector<128xf32>
    %14 = vector.shape_cast %13 : vector<128xf32> to vector<1x128xf32>
    %cst_8 = arith.constant 2.000000e+00 : f32
    %15 = vector.broadcast %cst_8 : f32 to vector<1x128xf32>
    %16 = arith.divf %14, %15 : vector<1x128xf32>
    %17 = vector.broadcast %9 : vector<1x128xf32> to vector<2x128xf32>
    %18 = arith.subf %5, %17 : vector<2x128xf32>
    %cst_9 = arith.constant 9.99999974E-6 : f32
    %19 = vector.broadcast %cst_9 : f32 to vector<1x128xf32>
    %20 = arith.addf %16, %19 : vector<1x128xf32>
    %21 = math.rsqrt %20 : vector<1x128xf32>
    %22 = vector.broadcast %21 : vector<1x128xf32> to vector<2x128xf32>
    %23 = arith.mulf %18, %22 : vector<2x128xf32>
    %c0_10 = arith.constant 0 : index
    %c0_11 = arith.constant 0 : index
    %24 = vector.load %arg3[%c0_10, %c0_11] : memref<1x128xf32, #tpu.memory_space<vmem>>, vector<1x128xf32>
    %25 = vector.broadcast %24 : vector<1x128xf32> to vector<2x128xf32>
    %26 = arith.mulf %23, %25 : vector<2x128xf32>
    %c0_12 = arith.constant 0 : index
    %c0_13 = arith.constant 0 : index
    %27 = vector.load %arg4[%c0_12, %c0_13] : memref<1x128xf32, #tpu.memory_space<vmem>>, vector<1x128xf32>
    %28 = vector.broadcast %27 : vector<1x128xf32> to vector<2x128xf32>
    %29 = arith.addf %26, %28 : vector<2x128xf32>
    %c0_14 = arith.constant 0 : index
    %c0_15 = arith.constant 0 : index
    %30 = vector.load %arg5[%c0_14, %c0_15] : memref<2x128xf32, #tpu.memory_space<vmem>>, vector<2x128xf32>
    tpu.vector_store %arg5[%c0_14, %c0_15], %29 {strides = array<i32>} : memref<2x128xf32, #tpu.memory_space<vmem>>, vector<2x128xf32>,
    return
  }
}

</mosaic_0001>

<bundles_post_ra>
// kernel: encoder_cnn_forward.3
= control target key start
LH: loop header
LB: loop body
LE: loop exit
PB: predicated region body
PF: predicated region fallthrough
CT: control target
= control target key end

     0   :  { %v278_v3 = vmov 0.0|0.0   ;;  %vm279_vm0 = vmmov 0   ;;  %v280_v6 = vmov 0.0   ;;  %s384_s0 = inlined_call_operand.vmem [shape: f32[2,128], index: 0, kind: input, shape index: {}]   ;;  %s385_s1 = inlined_call_operand.vmem [shape: f32[128,128], index: 1, kind: input, shape index: {}]   ;;  %s386_s2 = inlined_call_operand.vmem [shape: f32[1,128], index: 2, kind: input, shape index: {}]   ;;  %s387_s3 = inlined_call_operand.vmem [shape: f32[1,128], index: 3, kind: input, shape index: {}]   ;;  %s388_s4 = inlined_call_operand.vmem [shape: f32[1,128], index: 4, kind: input, shape index: {}]   ;;  %s389_s5 = inlined_call_operand.hbm [shape: f32[2,128], index: 5, kind: output, shape index: {}]  }
   0x1   :  { %v22_v0 = vld [vmem:[%s385_s1] sm:$0xff]  ;;  %v23_v1 = vld [vmem:[%s385_s1 + $0x8] sm:$0xff]  ;;  %v24_v2 = vld [vmem:[%s385_s1 + $0x10] sm:$0xff]  ;;  %224 = vmatprep.subr.bf16.mxu0 %v278_v3  ;;  %221 = vmatprep.mubr.msk.f32.mxu0 %vm279_vm0, %v280_v6 }
   0x2   :  { %v225_v4 = vpack.c.bf16 %v23_v1, %v22_v0  ;;  %v25_v5 = vld [vmem:[%s385_s1 + $0x18] sm:$0xff]  ;;  %v26_v8 = vld [vmem:[%s385_s1 + $0x20] sm:$0xff]  ;;  %v27_v9 = vld [vmem:[%s385_s1 + $0x28] sm:$0xff] }
   0x3   :  { %v228_v7 = vpack.c.bf16 %v25_v5, %v24_v2 }
   0x4   :  { %226 = vmatpush3.bf16.msra.mxu0 %v225_v4 }
   0x5   :  { %227 = vmatprep.subr.bf16.mxu0 %v278_v3 }
   0x6   :  { %10 = vsyncpa [#allocation3], 0  ;;  %v231_v10 = vpack.c.bf16 %v27_v9, %v26_v8  ;;  %v28_v11 = vld [vmem:[%s385_s1 + $0x30] sm:$0xff]  ;;  %v29_v12 = vld [vmem:[%s385_s1 + $0x38] sm:$0xff]  ;;  %vm115_vm1 = vcmask 1041408   ;;  %s281_s30 = smov [#allocation2]  }
   0x7   :  { %v234_v13 = vpack.c.bf16 %v29_v12, %v28_v11  ;;  %v30_v14 = vld [vmem:[%s385_s1 + $0x40] sm:$0xff]  ;;  %v31_v15 = vld [vmem:[%s385_s1 + $0x48] sm:$0xff]  ;;  %v32_v17 = vld [vmem:[%s385_s1 + $0x50] sm:$0xff]  ;;  %s161_s6 = sshll.u32 %s281_s30, 4  ;;  %s162_s6 = int_to_ptr.vmem [resolvable:$true] %s161_s6 }
   0x8   :  { %229 = vmatpush3.bf16.msra.mxu0 %v228_v7  ;;  %v237_v16 = vpack.c.bf16 %v31_v15, %v30_v14  ;;  %v33_v18 = vld [vmem:[%s385_s1 + $0x58] sm:$0xff]  ;;  %v34_v20 = vld [vmem:[%s385_s1 + $0x60] sm:$0xff]  ;;  %v35_v21 = vld [vmem:[%s385_s1 + $0x68] sm:$0xff]  ;;  %s254_s7 = scalar_lea.vmem %s162_s6, 32  ;;  %p259_p1 = scmp.lt.s32.totalorder %s162_s6, %s162_s6 }
   0x9   :  { %230 = vmatprep.subr.bf16.mxu0 %v278_v3  ;;  %v240_v19 = vpack.c.bf16 %v33_v18, %v32_v17  ;;  %v243_v22 = vpack.c.bf16 %v35_v21, %v34_v20  ;;  %v36_v23 = vld [vmem:[%s385_s1 + $0x70] sm:$0xff]  ;;  %v37_v24 = vld [vmem:[%s385_s1 + $0x78] sm:$0xff]  ;;  %v21_v26 = vld [vmem:[%s384_s0] sm:$0x3]  ;;  %p255_p0 = scmp.ne.s32.totalorder %s162_s6, %s254_s7  ;;  %p260_p2 = scmp.lt.s32.totalorder %s254_s7, %s254_s7 }
   0xa   :  { %v246_v25 = vpack.c.bf16 %v37_v24, %v36_v23  ;;  %v169_v27 = vld [vmem:[%s386_s2] ss:$0 sm:$0xff] }
   0xb   :  { %v170_v51 = vld [vmem:[%s387_s3] ss:$0 sm:$0xff]  ;;  %p261_p3 = por %p260_p2, %p259_p1 }
   0xc   :  { %232 = vmatpush3.bf16.msra.mxu0 %v231_v10  ;;  %v171_v53 = vld [vmem:[%s388_s4] ss:$0 sm:$0xff] }
   0xd   :  { %233 = vmatprep.subr.bf16.mxu0 %v278_v3  ;;  %p262_p4 = pnand %p261_p3, %p255_p0 }
  0x10   :  { %235 = vmatpush3.bf16.msra.mxu0 %v234_v13 }
  0x11   :  { %236 = vmatprep.subr.bf16.mxu0 %v278_v3 }
  0x14   :  { %238 = vmatpush3.bf16.msra.mxu0 %v237_v16 }
  0x15   :  { %239 = vmatprep.subr.bf16.mxu0 %v278_v3 }
  0x18   :  { %241 = vmatpush3.bf16.msra.mxu0 %v240_v19 }
  0x19   :  { %242 = vmatprep.subr.bf16.mxu0 %v278_v3 }
  0x1c   :  { %244 = vmatpush3.bf16.msra.mxu0 %v243_v22 }
  0x1d   :  { %245 = vmatprep.subr.bf16.mxu0 %v278_v3 }
  0x20   :  { %247 = vmatpush3.bf16.msra.mxu0 %v246_v25 }
  0x23   :  { %222 = vmatmul.mubr.f32.vlgmr.msra.gmra.mrb[0].mxu0 %v21_v26 }
  0xf6   :  { %v111_v28 = vpop.f32.mrb[0].mxu0 }
  0xf7   :  { %v112_v29 = vadd.f32 %v169_v27, %v111_v28  ;;  %v223_v30 = vpop.f32.mrb[1].mxu0 }
  0xf9   :  { %v116_v31 = vsel %vm115_vm1, %v112_v29, 0.0 }
  0xfa   :  { %v117_v32 = vrot.slane %v116_v31, 4 }
  0xfc   :  { %v118_v33 = vadd.f32 %v117_v32, %v116_v31 }
  0xfe   :  { %v119_v34 = vrot.slane %v118_v33, 2 }
 0x100   :  { %v120_v35 = vadd.f32 %v119_v34, %v118_v33 }
 0x102   :  { %v121_v36 = vrot.slane %v120_v35, 1 }
 0x104   :  { %v122_v37 = vadd.f32 %v121_v36, %v120_v35 }
 0x106   :  { %v124_v38 = vmul.f32 0.5, %v122_v37 }
 0x108   :  { %v125_v39 = vsub.f32 %v112_v29, %v124_v38 }
 0x10a   :  { %v126_v40 = vmul.f32 %v125_v39, %v125_v39 }
 0x10c   :  { %v127_v41 = vsel %vm115_vm1, %v126_v40, 0.0 }
 0x10d   :  { %v128_v42 = vrot.slane %v127_v41, 4 }
 0x10f   :  { %v129_v43 = vadd.f32 %v128_v42, %v127_v41 }
 0x111   :  { %v130_v44 = vrot.slane %v129_v43, 2 }
 0x113   :  { %v131_v45 = vadd.f32 %v130_v44, %v129_v43 }
 0x115   :  { %v132_v46 = vrot.slane %v131_v45, 1 }
 0x117   :  { %v133_v47 = vadd.f32 %v132_v46, %v131_v45 }
 0x119   :  { %v134_v48 = vmul.f32 0.5, %v133_v47 }
 0x11b   :  { %v135_v49 = vadd.f32 1e-05, %v134_v48 }
 0x11d   :  { %252 = vrsqrt.f32 %v135_v49 }
 0x127   :  { %v253_v50 = vpop.eup %252 }
 0x128   :  { %v137_v52 = vmul.f32 %v253_v50, %v125_v39 }
 0x12a   :  { %v145_v54 = vmul.f32 %v170_v51, %v137_v52 }
 0x12c   :  { %v153_v55 = vadd.f32 %v171_v53, %v145_v54 }
 0x12e   :  { %154 = vst [vmem:[#allocation2] sm:$0x3] %v153_v55 }
 0x12f   :  { %265 = shalt.err (!%p262_p4)
}
 0x130   :  { %s266_s9 = scalar_lea.hbm %s389_s5, 32 }
 0x131   :  { %p267_p5 = scmp.ne.s32.totalorder %s389_s5, %s266_s9  ;;  %p270_p6 = scmp.lt.u32.totalorder %s266_s9, %s389_s5 }
 0x133   :  { %p272_p7 = pnand %p270_p6, %p267_p5 }
 0x135   :  { %275 = shalt.err (!%p272_p7)
}
 0x136   :  { %164 = dma.vmem_to_hbm [thread:$0]  %s162_s6, 32, %s389_s5, [#allocation3]  }
 0x137   :  { %276 = dma.done.wait [#allocation3], 32  }
 0x138   :  { %277 = vsyncadd [#allocation3], 4294967264 }
 0x139   :  { %168 = vsyncpa [#allocation3], 1 }

// kernel: encoder_cnn_forward.2
= control target key start
LH: loop header
LB: loop body
LE: loop exit
PB: predicated region body
PF: predicated region fallthrough
CT: control target
= control target key end

     0   :  { %s1071_s12 = smov 0   ;;  %s1073_s13 = smov 0   ;;  %s1218_s0 = inlined_call_operand.vmem [shape: bf16[512,128], index: 0, kind: input, shape index: {}]   ;;  %s1219_s1 = inlined_call_operand.vmem [shape: bf16[128,128], index: 1, kind: input, shape index: {}]   ;;  %s1220_s2 = inlined_call_operand.vmem [shape: f32[1,128], index: 2, kind: input, shape index: {}]   ;;  %s1221_s3 = inlined_call_operand.vmem [shape: f32[2,1,128], index: 3, kind: output, shape index: {}]  }
   0x1   :  { %s1075_s14 = smov 0  }
   0x2 LB: > { %s25_s15 = sadd.s32 1, %s1045_s13  ;;  %p861_p0 = scmp.ge.s32.totalorder %s1049_s14, 1  ;;  %s1049_s14 = sphi %s1075_s14, %s13_s14   ;;  %s1045_s13 = sphi %s1073_s13, %s1223_s13   ;;  %s1041_s12 = sphi %s1071_s12, %s1222_s12  }
   0x3   : > { %p27_p1 = scmp.ge.s32.totalorder %s25_s15, 2  ;;  %p155_p2 = scmp.lt.s32.totalorder %s1049_s14, 3 }
   0x5   : > { %s1225_s15 = smov (%p27_p1, %s25_s15), 0  ;;  %p156_p3 = pnand %p861_p0, %p155_p2 }
   0x6   : > { %v1003_v0 = vld [vmem:[%s1219_s1] sm:$0xff] (!%p156_p3)   ;;  %s862_s18 = sshll.u32 (!%p156_p3), %s1041_s12, 5  ;;  %v1004_v1 = vld [vmem:[%s1219_s1 + $0x8] sm:$0xff] (!%p156_p3)   ;;  %v1005_v2 = vld [vmem:[%s1219_s1 + $0x10] sm:$0xff] (!%p156_p3)   ;;  %p189_p5 = scmp.lt.s32.totalorder (!%p156_p3), %s1041_s12, 1 }
   0x7   : > { %159 = sbr.rel (%p156_p3) target bundleno = 335 (0x14f), region = 32  ;;  %p181_p4 = scmp.lt.s32.totalorder (!%p156_p3), %s862_s18, 63  ;;  %915 = vmatprep.subr.bf16.mxu0 (!%p156_p3), %v1003_v0  ;;  %963 = vmatprep.subr.bf16.mxu1 (!%p156_p3), %v1003_v0  ;;  %v1006_v3 = vld [vmem:[%s1219_s1 + $0x18] sm:$0xff] (!%p156_p3)   ;;  %v1007_v5 = vld [vmem:[%s1219_s1 + $0x20] sm:$0xff] (!%p156_p3)   ;;  %v1008_v6 = vld [vmem:[%s1219_s1 + $0x28] sm:$0xff] (!%p156_p3)  }
   0x8   : > { %916 = vmatpush3.bf16.msra.mxu0 (!%p156_p3), %v1003_v0  ;;  %971 = vmatpush3.bf16.msra.mxu1 (!%p156_p3), %v1003_v0  ;;  %v1009_v8 = vld [vmem:[%s1219_s1 + $0x30] sm:$0xff] (!%p156_p3)   ;;  %v1010_v9 = vld [vmem:[%s1219_s1 + $0x38] sm:$0xff] (!%p156_p3)   ;;  %v1140_v24 = vld [vmem:[%s1220_s2] ss:$0 sm:$0xff] (!%p156_p3) }
   0x9   : > { %917 = vmatprep.subr.bf16.mxu0 (!%p156_p3), %v1004_v1  ;;  %964 = vmatprep.subr.bf16.mxu1 (!%p156_p3), %v1004_v1 }
   0xc   : > { %918 = vmatpush3.bf16.msra.mxu0 (!%p156_p3), %v1004_v1  ;;  %972 = vmatpush3.bf16.msra.mxu1 (!%p156_p3), %v1004_v1 }
   0xd   : > { %919 = vmatprep.subr.bf16.mxu0 (!%p156_p3), %v1005_v2  ;;  %965 = vmatprep.subr.bf16.mxu1 (!%p156_p3), %v1005_v2 }
   0xe   : > { %s1227_s18 = smov (!%p181_p4, %s862_s18), 63  ;;  %s1229_s12 = smov (!%p189_p5, %s1041_s12), 1 }
   0xf   : > { %s863_s23 = sshll.u32 %s1227_s18, 2  ;;  %s191_s18 = scalar_lea.vmem %s1221_s3, %s1229_s12 }
  0x10   : > { %s1104_s26 = scalar_lea.vmem %s1218_s0, %s863_s23  ;;  %920 = vmatpush3.bf16.msra.mxu0 %v1005_v2  ;;  %973 = vmatpush3.bf16.msra.mxu1 %v1005_v2 }
  0x11   : > { %v1011_v4 = vld [vmem:[%s1104_s26] sm:$0xff]   ;;  %921 = vmatprep.subr.bf16.mxu0 %v1006_v3  ;;  %966 = vmatprep.subr.bf16.mxu1 %v1006_v3  ;;  %v1012_v10 = vld [vmem:[%s1104_s26 + $0x8] sm:$0xff]   ;;  %v1013_v12 = vld [vmem:[%s1104_s26 + $0x10] sm:$0xff]  }
  0x12   : > { %931 = vmatprep.mubr.bf16.mxu0 %v1011_v4  ;;  %v1019_v7 = vld [vmem:[%s1104_s26 + $0x40] sm:$0xff]   ;;  %v1020_v11 = vld [vmem:[%s1104_s26 + $0x48] sm:$0xff]   ;;  %v1021_v13 = vld [vmem:[%s1104_s26 + $0x50] sm:$0xff]  }
  0x13   : > { %947 = vmatprep.mubr.bf16.mxu1 %v1019_v7  ;;  %v1014_v14 = vld [vmem:[%s1104_s26 + $0x18] sm:$0xff]   ;;  %v1015_v16 = vld [vmem:[%s1104_s26 + $0x20] sm:$0xff]   ;;  %v1016_v18 = vld [vmem:[%s1104_s26 + $0x28] sm:$0xff]  }
  0x14   : > { %922 = vmatpush3.bf16.msra.mxu0 %v1006_v3  ;;  %974 = vmatpush3.bf16.msra.mxu1 %v1006_v3  ;;  %v1022_v15 = vld [vmem:[%s1104_s26 + $0x58] sm:$0xff]   ;;  %v1023_v17 = vld [vmem:[%s1104_s26 + $0x60] sm:$0xff]   ;;  %v1024_v19 = vld [vmem:[%s1104_s26 + $0x68] sm:$0xff]  }
  0x15   : > { %923 = vmatprep.subr.bf16.mxu0 %v1007_v5  ;;  %967 = vmatprep.subr.bf16.mxu1 %v1007_v5  ;;  %v1017_v20 = vld [vmem:[%s1104_s26 + $0x30] sm:$0xff]   ;;  %v1018_v22 = vld [vmem:[%s1104_s26 + $0x38] sm:$0xff]  }
  0x16   : > { %v1025_v21 = vld [vmem:[%s1104_s26 + $0x70] sm:$0xff]   ;;  %v1026_v23 = vld [vmem:[%s1104_s26 + $0x78] sm:$0xff]  }
  0x18   : > { %924 = vmatpush3.bf16.msra.mxu0 %v1007_v5  ;;  %975 = vmatpush3.bf16.msra.mxu1 %v1007_v5 }
  0x19   : > { %925 = vmatprep.subr.bf16.mxu0 %v1008_v6  ;;  %968 = vmatprep.subr.bf16.mxu1 %v1008_v6 }
  0x1c   : > { %926 = vmatpush3.bf16.msra.mxu0 %v1008_v6  ;;  %976 = vmatpush3.bf16.msra.mxu1 %v1008_v6 }
  0x1d   : > { %927 = vmatprep.subr.bf16.mxu0 %v1009_v8  ;;  %969 = vmatprep.subr.bf16.mxu1 %v1009_v8 }
  0x20   : > { %928 = vmatpush3.bf16.msra.mxu0 %v1009_v8  ;;  %977 = vmatpush3.bf16.msra.mxu1 %v1009_v8 }
  0x21   : > { %929 = vmatprep.subr.bf16.mxu0 %v1010_v9  ;;  %970 = vmatprep.subr.bf16.mxu1 %v1010_v9 }
  0x24   : > { %930 = vmatpush3.bf16.msra.mxu0 %v1010_v9  ;;  %978 = vmatpush3.bf16.msra.mxu1 %v1010_v9 }
  0x27   : > { %932 = vmatmul.mubr.bf16.vlgmr.msra.gmra.mrb[0].mxu0 %v1012_v10  ;;  %948 = vmatmul.mubr.bf16.vlgmr.msra.gmra.mrb[0].mxu1 %v1020_v11 }
  0x28   : > { %935 = vmatprep.mubr.bf16.mxu0 %v1013_v12  ;;  %951 = vmatprep.mubr.bf16.mxu1 %v1021_v13 }
  0x2f   : > { %936 = vmatmul.mubr.bf16.gmra.mrb[4].mxu0 %v1014_v14  ;;  %952 = vmatmul.mubr.bf16.gmra.mrb[4].mxu1 %v1022_v15 }
  0x30   : > { %939 = vmatprep.mubr.bf16.mxu0 %v1015_v16  ;;  %955 = vmatprep.mubr.bf16.mxu1 %v1023_v17 }
  0x37   : > { %940 = vmatmul.mubr.bf16.gmra.mrb[8].mxu0 %v1016_v18  ;;  %956 = vmatmul.mubr.bf16.gmra.mrb[8].mxu1 %v1024_v19 }
  0x38   : > { %943 = vmatprep.mubr.bf16.mxu0 %v1017_v20  ;;  %959 = vmatprep.mubr.bf16.mxu1 %v1025_v21 }
  0x3f   : > { %944 = vmatmul.mubr.bf16.gmra.mrb[12].mxu0 %v1018_v22  ;;  %960 = vmatmul.mubr.bf16.gmra.mrb[12].mxu1 %v1026_v23 }
  0xfa   : > { %v933_v25 = vpop.f32.mrb[0].mxu0  ;;  %v1142_v26 = vpop.f32.mrb[0].mxu1 }
  0xfb   : > { %v499_v27 = vpop.f32.mrb[1].mxu0  ;;  %v1144_v28 = vpop.f32.mrb[1].mxu1  ;;  %v628_v34 = vadd.f32 %v933_v25, %v1140_v24 }
  0xfc   : > { %v626_v29 = vadd.f32 %v1140_v24, %v499_v27  ;;  %v934_v30 = vpop.f32.mrb[2].mxu0  ;;  %v1147_v31 = vpop.f32.mrb[2].mxu1 }
  0xfd   : > { %v502_v32 = vpop.f32.mrb[3].mxu0  ;;  %v1149_v33 = vpop.f32.mrb[3].mxu1  ;;  %v629_v37 = vadd.f32 %v934_v30, %v1140_v24  ;;  %v727_v39 = vmax.f32 %v628_v34, 0.0 }
  0xfe   : > { %v627_v35 = vadd.f32 %v1140_v24, %v502_v32  ;;  %v725_v36 = vmax.f32 %v626_v29, 0.0 }
  0xff   : > { %v728_v45 = vmax.f32 %v629_v37, 0.0 }
 0x100   : > { %v726_v38 = vmax.f32 %v627_v35, 0.0 }
 0x102   : > { %v757_v40 = vadd.f32 %v726_v38, %v725_v36  ;;  %v937_v41 = vpop.f32.mrb[4].mxu0  ;;  %v1154_v42 = vpop.f32.mrb[4].mxu1 }
 0x103   : > { %v515_v43 = vpop.f32.mrb[5].mxu0  ;;  %v1156_v44 = vpop.f32.mrb[5].mxu1  ;;  %v632_v52 = vadd.f32 %v937_v41, %v1140_v24 }
 0x104   : > { %v758_v46 = vadd.f32 %v757_v40, %v727_v39  ;;  %v630_v47 = vadd.f32 %v1140_v24, %v515_v43  ;;  %v938_v48 = vpop.f32.mrb[6].mxu0  ;;  %v1159_v49 = vpop.f32.mrb[6].mxu1  ;;  %v642_v40 = vadd.f32 %v1140_v24, %v1144_v28  ;;  %v646_v28 = vadd.f32 %v1140_v24, %v1156_v44 }
 0x105   : > { %v518_v50 = vpop.f32.mrb[7].mxu0  ;;  %v1161_v51 = vpop.f32.mrb[7].mxu1  ;;  %v633_v57 = vadd.f32 %v938_v48, %v1140_v24  ;;  %v731_v59 = vmax.f32 %v632_v52, 0.0  ;;  %v643_v48 = vadd.f32 %v1140_v24, %v1149_v33 }
 0x106   : > { %v729_v53 = vmax.f32 %v630_v47, 0.0  ;;  %v759_v54 = vadd.f32 %v758_v46, %v728_v45  ;;  %v631_v55 = vadd.f32 %v1140_v24, %v518_v50  ;;  %v741_v47 = vmax.f32 %v642_v40, 0.0 }
 0x107   : > { %v732_v1 = vmax.f32 %v633_v57, 0.0  ;;  %v644_v50 = vadd.f32 %v1142_v26, %v1140_v24  ;;  %v647_v33 = vadd.f32 %v1140_v24, %v1161_v51  ;;  %v648_v26 = vadd.f32 %v1154_v42, %v1140_v24 }
 0x108   : > { %v760_v56 = vadd.f32 %v759_v54, %v729_v53  ;;  %v730_v58 = vmax.f32 %v631_v55, 0.0  ;;  %v645_v54 = vadd.f32 %v1147_v31, %v1140_v24  ;;  %v742_v55 = vmax.f32 %v643_v48, 0.0 }
 0x109   : > { %v649_v31 = vadd.f32 %v1159_v49, %v1140_v24  ;;  %v747_v44 = vmax.f32 %v648_v26, 0.0 }
 0x10a   : > { %v761_v60 = vadd.f32 %v760_v56, %v730_v58  ;;  %v941_v61 = vpop.f32.mrb[8].mxu0  ;;  %v1166_v62 = vpop.f32.mrb[8].mxu1  ;;  %v743_v56 = vmax.f32 %v644_v50, 0.0  ;;  %v744_v58 = vmax.f32 %v645_v54, 0.0 }
 0x10b   : > { %v531_v63 = vpop.f32.mrb[9].mxu0  ;;  %v595_v0 = vpop.f32.mrb[9].mxu1  ;;  %v636_v8 = vadd.f32 %v941_v61, %v1140_v24  ;;  %v652_v51 = vadd.f32 %v1166_v62, %v1140_v24 }
 0x10c   : > { %v762_v2 = vadd.f32 %v761_v60, %v731_v59  ;;  %v634_v3 = vadd.f32 %v1140_v24, %v531_v63  ;;  %v942_v4 = vpop.f32.mrb[10].mxu0  ;;  %v1169_v5 = vpop.f32.mrb[10].mxu1  ;;  %v745_v60 = vmax.f32 %v646_v28, 0.0 }
 0x10d   : > { %v534_v6 = vpop.f32.mrb[11].mxu0  ;;  %v598_v7 = vpop.f32.mrb[11].mxu1  ;;  %v637_v13 = vadd.f32 %v942_v4, %v1140_v24  ;;  %v735_v15 = vmax.f32 %v636_v8, 0.0  ;;  %v748_v4 = vmax.f32 %v649_v31, 0.0 }
 0x10e   : > { %v733_v9 = vmax.f32 %v634_v3, 0.0  ;;  %v763_v10 = vadd.f32 %v762_v2, %v732_v1  ;;  %v635_v11 = vadd.f32 %v1140_v24, %v534_v6  ;;  %v746_v1 = vmax.f32 %v647_v33, 0.0 }
 0x10f   : > { %v736_v21 = vmax.f32 %v637_v13, 0.0  ;;  %v650_v2 = vadd.f32 %v1140_v24, %v595_v0  ;;  %v751_v13 = vmax.f32 %v652_v51, 0.0 }
 0x110   : > { %v764_v12 = vadd.f32 %v763_v10, %v733_v9  ;;  %v734_v14 = vmax.f32 %v635_v11, 0.0  ;;  %v651_v9 = vadd.f32 %v1140_v24, %v598_v7  ;;  %v653_v11 = vadd.f32 %v1169_v5, %v1140_v24 }
 0x111   : > { %v749_v8 = vmax.f32 %v650_v2, 0.0 }
 0x112   : > { %v765_v16 = vadd.f32 %v764_v12, %v734_v14  ;;  %v945_v17 = vpop.f32.mrb[12].mxu0  ;;  %v961_v18 = vpop.f32.mrb[12].mxu1  ;;  %v750_v12 = vmax.f32 %v651_v9, 0.0  ;;  %v752_v14 = vmax.f32 %v653_v11, 0.0 }
 0x113   : > { %v547_v19 = vpop.f32.mrb[13].mxu0  ;;  %v611_v20 = vpop.f32.mrb[13].mxu1  ;;  %v640_v32 = vadd.f32 %v945_v17, %v1140_v24  ;;  %v656_v7 = vadd.f32 %v961_v18, %v1140_v24 }
 0x114   : > { %v766_v22 = vadd.f32 %v765_v16, %v735_v15  ;;  %v638_v23 = vadd.f32 %v1140_v24, %v547_v19  ;;  %v946_v25 = vpop.f32.mrb[14].mxu0  ;;  %v962_v27 = vpop.f32.mrb[14].mxu1  ;;  %v654_v49 = vadd.f32 %v1140_v24, %v611_v20 }
 0x115   : > { %v550_v29 = vpop.f32.mrb[15].mxu0  ;;  %v614_v30 = vpop.f32.mrb[15].mxu1  ;;  %v641_v38 = vadd.f32 %v946_v25, %v1140_v24  ;;  %v739_v41 = vmax.f32 %v640_v32, 0.0  ;;  %v755_v5 = vmax.f32 %v656_v7, 0.0 }
 0x116   : > { %v737_v34 = vmax.f32 %v638_v23, 0.0  ;;  %v767_v35 = vadd.f32 %v766_v22, %v736_v21  ;;  %v639_v36 = vadd.f32 %v1140_v24, %v550_v29  ;;  %v753_v16 = vmax.f32 %v654_v49, 0.0 }
 0x117   : > { %v740_v45 = vmax.f32 %v641_v38, 0.0  ;;  %v655_v17 = vadd.f32 %v1140_v24, %v614_v30  ;;  %v657_v21 = vadd.f32 %v962_v27, %v1140_v24 }
 0x118   : > { %v768_v37 = vadd.f32 %v767_v35, %v737_v34  ;;  %v738_v39 = vmax.f32 %v639_v36, 0.0 }
 0x119   : > { %v754_v22 = vmax.f32 %v655_v17, 0.0  ;;  %v756_v25 = vmax.f32 %v657_v21, 0.0 }
 0x11a   : > { %v769_v43 = vadd.f32 %v768_v37, %v738_v39 }
 0x11c   : > { %v770_v46 = vadd.f32 %v769_v43, %v739_v41 }
 0x11e   : > { %v771_v52 = vadd.f32 %v770_v46, %v740_v45 }
 0x120   : > { %v772_v53 = vadd.f32 %v771_v52, %v741_v47 }
 0x122   : > { %v773_v57 = vadd.f32 %v772_v53, %v742_v55 }
 0x124   : > { %v774_v59 = vadd.f32 %v773_v57, %v743_v56 }
 0x126   : > { %v775_v61 = vadd.f32 %v774_v59, %v744_v58 }
 0x128   : > { %v776_v63 = vadd.f32 %v775_v61, %v745_v60 }
 0x12a   : > { %v777_v3 = vadd.f32 %v776_v63, %v746_v1 }
 0x12c   : > { %v778_v6 = vadd.f32 %v777_v3, %v747_v44 }
 0x12e   : > { %v779_v10 = vadd.f32 %v778_v6, %v748_v4 }
 0x130   : > { %v780_v42 = vadd.f32 %v779_v10, %v749_v8 }
 0x132   : > { %v781_v0 = vadd.f32 %v780_v42, %v750_v12 }
 0x134   : > { %v782_v15 = vadd.f32 %v781_v0, %v751_v13 }
 0x136   : > { %v783_v62 = vadd.f32 %v782_v15, %v752_v14 }
 0x138   : > { %v784_v19 = vadd.f32 %v783_v62, %v753_v16 }
 0x13a   : > { %v785_v23 = vadd.f32 %v784_v19, %v754_v22 }
 0x13c   : > { %v786_v20 = vadd.f32 %v785_v23, %v755_v5 }
 0x13e   : > { %v787_v29 = vadd.f32 %v786_v20, %v756_v25 }
 0x140   : > { %v788_v32 = vrot.slane %v787_v29, 4 }
 0x142   : > { %v789_v34 = vadd.f32 %v788_v32, %v787_v29 }
 0x144   : > { %v790_v35 = vrot.slane %v789_v34, 2 }
 0x146   : > { %v791_v36 = vadd.f32 %v790_v35, %v789_v34 }
 0x148   : > { %v792_v30 = vrot.slane %v791_v36, 1 }
 0x14a   : > { %v793_v37 = vadd.f32 %v792_v30, %v791_v36 }
 0x14c   : > { %v795_v18 = vmul.f32 0.00390625, %v793_v37 }
 0x14e   : > { %796 = vst [vmem:[%s191_s18] sm:$0x1] %v795_v18 }
 0x14f PF: > { %s13_s14 = sadd.s32 1, %s1049_s14   ;;  %s1222_s12 = smov %s1045_s13 }
 0x150   : > { %p10_p6 = scmp.ge.s32.totalorder %s13_s14, 4   ;;  %s1223_s13 = smov %s1225_s15 }
 0x152   :  { %12 = sbr.rel (!%p10_p6) target bundleno = 2 (0x2), region = 71 }

</bundles_post_ra>
